<compile_context>
chip_gen: v5e
topology: v5e:2x2
jax: 0.10.0
libtpu: 0.0.40
codegen_flags: <defaults>
</compile_context>

<pallas_src>
import functools

import jax
import jax.numpy as jnp
from jax.experimental import pallas as pl
from jax.experimental.pallas import tpu as pltpu


def _round_up(a: int, b: int) -> int:
    return (a + b - 1) // b * b


def _sublane_multiple(dtype) -> int:
    # packed sublane multiple per dtype width: f32 -> 8, bf16 -> 16, int8/fp8 -> 32
    return {4: 8, 2: 16, 1: 32}.get(jnp.dtype(dtype).itemsize, 8)


_LANE_CANDIDATES = (1024, 512, 256, 128)


def _choose_layout(n: int, sub: int):
    """Return (lanes, rows, needs_pad) for a lane-dense 2-D view of n elements."""
    if n % 128 == 0:
        # Pad-free: pick a multiple-of-128 divisor of n (prefer sublane-full rows).
        for lanes in _LANE_CANDIDATES:
            if n % lanes == 0 and (n // lanes) >= sub:
                return lanes, n // lanes, False
        for lanes in _LANE_CANDIDATES:
            if n % lanes == 0:
                return lanes, n // lanes, False
    # Ragged fallback (rare for UNet activations): small pad + slice round-trip.
    # TODO(synk): replace with an in-kernel masked last tile if this path gets hot.
    lanes = 512 if n >= sub * 512 else 128
    rows = _round_up(pl.cdiv(n, lanes), sub)
    return lanes, rows, True


def _tpu_tile_params():
    """(target_tile_bytes per buffer, min grid tiles) for the local TPU generation."""
    try:
        kind = jax.devices()[0].device_kind.lower()
    except Exception:  # pragma: no cover - defensive
        kind = ""
    if "v7" in kind:
        return 4 * 1024 * 1024, 4   # 2 TCs: keep >=4 tiles so both cores get work
    if "v6" in kind:
        return 4 * 1024 * 1024, 2   # 32 MiB scoped default -> 16 MiB total is fine
    # v5e (16 MiB scoped default) and unknown chips: stay conservative.
    return 2 * 1024 * 1024, 2


def _choose_tile_rows(rows: int, lanes: int, itemsize: int, sub: int,
                      target_tile_bytes: int, min_tiles: int) -> int:
    if rows <= sub:
        return rows  # single block covering the full (tiny) row dim
    max_rows_vmem = max(sub, (target_tile_bytes // (lanes * itemsize)) // sub * sub)
    # Keep at least `min_tiles` grid steps when the tensor is big enough, so the
    # pipeline has work to overlap and v7x can shard across both TensorCores.
    rows_per_tile_split = max(sub, (rows // min_tiles) // sub * sub)
    tr = min(max_rows_vmem, rows_per_tile_split)
    tr = min(tr, (rows // sub) * sub)
    return max(tr, sub)


def _temporal_quant_kernel(step_ref, delta_ref, inv_delta_ref, zp_ref,
                           x_ref, o_ref, *, n_levels: int):
    # Per-timestep scalars: resident in SMEM for the whole grid, no per-step DMA.
    t = step_ref[0]
    delta = delta_ref[t]
    inv_delta = inv_delta_ref[t]     # precomputed in wrapper (no per-step divide)
    zp = zp_ref[t]

    x = x_ref[...].astype(jnp.float32)           # f32 math regardless of I/O dtype
    x_int = jnp.round(x * inv_delta) + zp
    x_q = jnp.clip(x_int, 0.0, jnp.float32(n_levels - 1))   # == relu-chain clipping
    o_ref[...] = ((x_q - zp) * delta).astype(o_ref.dtype)


def temporal_activation_quantize(x, delta_list, zp_list, current_step, n_bits: int = 8):
    """Forward of TemporalActivationQuantizer (inited branch).

    x            : activation tensor, any shape (f32 or bf16)
    delta_list   : (total_steps,) per-timestep scale
    zp_list      : (total_steps,) per-timestep zero point
    current_step : int index into the lists
    """
    assert 2 <= n_bits <= 8, "bitwidth not supported"
    n_levels = 2 ** n_bits

    orig_shape = x.shape
    n = x.size
    itemsize = jnp.dtype(x.dtype).itemsize
    sub = _sublane_multiple(x.dtype)

    # --- lane-dense 2-D layout (pad-free whenever n % 128 == 0) ----------------
    lanes, rows, needs_pad = _choose_layout(n, sub)
    xf = x.reshape(-1)
    if needs_pad:
        xf = jnp.pad(xf, (0, rows * lanes - n))  # ragged fallback only
    x2 = xf.reshape(rows, lanes)

    # --- tile sizing ------------------------------------------------------------
    target_tile_bytes, min_tiles = _tpu_tile_params()
    tr = _choose_tile_rows(rows, lanes, itemsize, sub, target_tile_bytes, min_tiles)
    grid = (pl.cdiv(rows, tr),)                  # "parallel" axis -> megacore shard

    step_arr = jnp.asarray([current_step], dtype=jnp.int32)
    dl = jnp.asarray(delta_list, dtype=jnp.float32).reshape(-1)
    inv_dl = 1.0 / dl                            # tiny (T,) divide, done once here
    zl = jnp.asarray(zp_list, dtype=jnp.float32).reshape(-1)

    smem_spec = pl.BlockSpec(memory_space=pltpu.MemorySpace.SMEM)

    out2 = pl.pallas_call(
        functools.partial(_temporal_quant_kernel, n_levels=n_levels),
        out_shape=jax.ShapeDtypeStruct((rows, lanes), x.dtype),
        grid_spec=pltpu.PrefetchScalarGridSpec(
            num_scalar_prefetch=0,
            grid=grid,
            in_specs=[
                smem_spec,                                    # step index
                smem_spec,                                    # delta_list
                smem_spec,                                    # inv_delta_list
                smem_spec,                                    # zp_list
                pl.BlockSpec((tr, lanes), lambda i: (i, 0)),  # x tile
            ],
            out_specs=pl.BlockSpec((tr, lanes), lambda i: (i, 0)),
        ),
        compiler_params=pltpu.CompilerParams(
            dimension_semantics=("parallel",)),
        cost_estimate=pl.CostEstimate(
            flops=5 * n,
            transcendentals=0,
            bytes_accessed=2 * n * itemsize),
    )(step_arr, dl, inv_dl, zl, x2)

    out = out2.reshape(-1)
    if needs_pad:
        out = out[:n]
    return out.reshape(orig_shape)


def _reference(x, delta, zero_point, n_bits=8):
    """Torch-faithful reference: divide + relu-chain clipping."""
    n_levels = 2 ** n_bits
    x_int = jnp.round(x / delta) + zero_point
    x_q = x_int + jnp.maximum(0.0 - x_int, 0.0)
    x_q = x_q - jnp.maximum(x_q - (n_levels - 1), 0.0)
    return (x_q - zero_point) * delta


if __name__ == "__main__":
    key = jax.random.PRNGKey(0)
    k1, k2, k3, k4 = jax.random.split(key, 4)

    num_steps = 8
    current_step = 5

    # Per-timestep params. Deltas are (random) powers of two so the kernel's
    # hoisted-reciprocal formulation is bit-identical to the torch-style divide
    # in this self-check; for arbitrary deltas they differ by <=1 ulp pre-round.
    exps = jax.random.randint(k2, (num_steps,), 4, 8)
    delta_list = 2.0 ** (-exps.astype(jnp.float32))
    zp_list = jnp.round(jax.random.uniform(k3, (num_steps,), minval=0.0, maxval=255.0))

    # Check 1: small activation tensor (B=2, C=4, H=W=16) -> single pad-free tile.
    x1 = jax.random.normal(k1, (2, 4, 16, 16), dtype=jnp.float32)
    out1 = jax.block_until_ready(
        temporal_activation_quantize(x1, delta_list, zp_list, current_step, n_bits=8))
    ref1 = _reference(x1, delta_list[current_step], zp_list[current_step], n_bits=8)
    if not jnp.allclose(out1, ref1, atol=1e-6, rtol=1e-6):
        raise AssertionError("Pallas kernel mismatch vs reference (case 1)")

    # Check 2: slightly larger tensor -> multi-tile grid, still pad-free.
    x2 = jax.random.normal(k4, (2, 4, 64, 64), dtype=jnp.float32)
    out2 = jax.block_until_ready(
        temporal_activation_quantize(x2, delta_list, zp_list, current_step, n_bits=8))
    ref2 = _reference(x2, delta_list[current_step], zp_list[current_step], n_bits=8)
    if not jnp.allclose(out2, ref2, atol=1e-6, rtol=1e-6):
        raise AssertionError("Pallas kernel mismatch vs reference (case 2)")

    print("KERNEL_OK")
</pallas_src>

<mosaic_0001>
module attributes {stable_mosaic.version = 11 : i64} {
  func.func @_temporal_quant_kernel(%arg0: i32, %arg1: memref<1xi32, #tpu.memory_space<smem>>, %arg2: memref<8xf32, #tpu.memory_space<smem>>, %arg3: memref<8xf32, #tpu.memory_space<smem>>, %arg4: memref<8xf32, #tpu.memory_space<smem>>, %arg5: memref<8x256xf32, #tpu.memory_space<vmem>>, %arg6: memref<8x256xf32, #tpu.memory_space<vmem>>) attributes {dimension_semantics = [#tpu.dimension_semantics<parallel>], iteration_bounds = array<i64: 1>, scalar_prefetch = 0 : i64, scratch_operands = 0 : i64, tpu.core_type = #tpu.core_type<tc>, window_params = [{transform_indices = @transform_0, window_bounds = array<i64: 1>}, {transform_indices = @transform_1, window_bounds = array<i64: 8>}, {transform_indices = @transform_2, window_bounds = array<i64: 8>}, {transform_indices = @transform_3, window_bounds = array<i64: 8>}, {transform_indices = @transform_4, window_bounds = array<i64: 8, 256>}, {transform_indices = @transform_5, window_bounds = array<i64: 8, 256>}]} {
    %c0 = arith.constant 0 : index
    %0 = memref.load %arg1[%c0] : memref<1xi32, #tpu.memory_space<smem>>
    %1 = arith.index_cast %0 : i32 to index
    %2 = memref.load %arg2[%1] : memref<8xf32, #tpu.memory_space<smem>>
    %3 = arith.index_cast %0 : i32 to index
    %4 = memref.load %arg3[%3] : memref<8xf32, #tpu.memory_space<smem>>
    %5 = arith.index_cast %0 : i32 to index
    %6 = memref.load %arg4[%5] : memref<8xf32, #tpu.memory_space<smem>>
    %c0_0 = arith.constant 0 : index
    %c0_1 = arith.constant 0 : index
    %7 = vector.load %arg5[%c0_0, %c0_1] : memref<8x256xf32, #tpu.memory_space<vmem>>, vector<8x256xf32>
    %8 = vector.broadcast %4 : f32 to vector<8x256xf32>
    %9 = arith.mulf %7, %8 : vector<8x256xf32>
    %10 = math.roundeven %9 : vector<8x256xf32>
    %11 = vector.broadcast %6 : f32 to vector<8x256xf32>
    %12 = arith.addf %10, %11 : vector<8x256xf32>
    %cst = arith.constant 0.000000e+00 : f32
    %cst_2 = arith.constant 2.550000e+02 : f32
    %13 = vector.broadcast %cst : f32 to vector<8x256xf32>
    %14 = arith.maximumf %13, %12 : vector<8x256xf32>
    %15 = vector.broadcast %cst_2 : f32 to vector<8x256xf32>
    %16 = arith.minimumf %15, %14 : vector<8x256xf32>
    %17 = vector.broadcast %6 : f32 to vector<8x256xf32>
    %18 = arith.subf %16, %17 : vector<8x256xf32>
    %19 = vector.broadcast %2 : f32 to vector<8x256xf32>
    %20 = arith.mulf %18, %19 : vector<8x256xf32>
    %c0_3 = arith.constant 0 : index
    %c0_4 = arith.constant 0 : index
    %21 = vector.load %arg6[%c0_3, %c0_4] : memref<8x256xf32, #tpu.memory_space<vmem>>, vector<8x256xf32>
    tpu.vector_store %arg6[%c0_3, %c0_4], %20 {strides = array<i32>} : memref<8x256xf32, #tpu.memory_space<vmem>>, vector<8x256xf32>,
    return
  }
  func.func @transform_0(%arg0: i32) -> i32 {
    %c0_i32 = arith.constant 0 : i32
    %c0_i32_0 = arith.constant 0 : i32
    return %c0_i32 : i32
  }
  func.func @transform_1(%arg0: i32) -> i32 {
    %c0_i32 = arith.constant 0 : i32
    %c0_i32_0 = arith.constant 0 : i32
    return %c0_i32 : i32
  }
  func.func @transform_2(%arg0: i32) -> i32 {
    %c0_i32 = arith.constant 0 : i32
    %c0_i32_0 = arith.constant 0 : i32
    return %c0_i32 : i32
  }
  func.func @transform_3(%arg0: i32) -> i32 {
    %c0_i32 = arith.constant 0 : i32
    %c0_i32_0 = arith.constant 0 : i32
    return %c0_i32 : i32
  }
  func.func @transform_4(%arg0: i32) -> (i32, i32) {
    %c0_i32 = arith.constant 0 : i32
    %c0_i32_0 = arith.constant 0 : i32
    return %arg0, %c0_i32 : i32, i32
  }
  func.func @transform_5(%arg0: i32) -> (i32, i32) {
    %c0_i32 = arith.constant 0 : i32
    %c0_i32_0 = arith.constant 0 : i32
    return %arg0, %c0_i32 : i32, i32
  }
}

</mosaic_0001>

<bundles_post_ra>
// kernel: tpu_custom_call.1
= control target key start
LH: loop header
LB: loop body
LE: loop exit
PB: predicated region body
PF: predicated region fallthrough
CT: control target
= control target key end

     0   :  { %11 = vsyncpa [#allocation6], 0  ;;  %s288_s0 = inlined_call_operand.<no memory space> [shape: s32[1], index: 0, kind: input, shape index: {}]   ;;  %s289_s1 = inlined_call_operand.vmem [shape: f32[8], index: 1, kind: input, shape index: {}]   ;;  %s290_s2 = inlined_call_operand.vmem [shape: f32[8], index: 2, kind: input, shape index: {}]   ;;  %s291_s3 = inlined_call_operand.vmem [shape: f32[8], index: 3, kind: input, shape index: {}]   ;;  %s292_s4 = inlined_call_operand.hbm [shape: f32[8,256], index: 4, kind: input, shape index: {}]   ;;  %s293_s5 = inlined_call_operand.hbm [shape: f32[8,256], index: 5, kind: output, shape index: {}]  }
   0x1   :  { %12 = vsyncpa [#allocation8], 0 }
   0x2   :  { %13 = vsyncpa [#allocation4], 0  ;;  %s31_s20 = sshll.u32 %s290_s2, 4  ;;  %s32_s20 = int_to_ptr.vmem [resolvable:$true] %s31_s20 }
   0x3   :  { %14 = vsyncpa [#allocation5], 0  ;;  %s22_s23 = sshll.u32 %s289_s1, 4  ;;  %s229_s24 = smov [#allocation7]   ;;  %s23_s23 = int_to_ptr.vmem [resolvable:$true] %s22_s23 }
   0x4   :  { %34 = dma.vmem_to_smem %s32_s20, 16, %s229_s24, [#allocation8]  }
   0x5   :  { %s230_s25 = smov [#allocation3]   ;;  %s40_s28 = sshll.u32 %s291_s3, 4  ;;  %s41_s28 = int_to_ptr.vmem [resolvable:$true] %s40_s28 }
   0x6   :  { %25 = dma.vmem_to_smem %s23_s23, 16, %s230_s25, [#allocation6]  }
   0x7   :  { %s49_s2 = sshll.u32 %s292_s4, 4  ;;  %s231_s6 = smov [#allocation9]   ;;  %s50_s2 = int_to_ptr.hbm [resolvable:$true] %s49_s2 }
   0x8   :  { %43 = dma.vmem_to_smem %s41_s28, 16, %s231_s6, [#allocation8]  }
   0x9   :  { %s232_s7 = smov [#allocation10]  }
   0xa   :  { %s51_s8 = sshll.u32 %s232_s7, 4  ;;  %s52_s8 = int_to_ptr.vmem [resolvable:$true] %s51_s8 }
   0xb   :  { %54 = dma.hbm_to_vmem [thread:$0]  %s50_s2, 256, %s52_s8, [#allocation4]  }
   0xc   :  { %221 = dma.done.wait [#allocation6], 16  }
   0xd   :  { %222 = vsyncadd [#allocation6], 4294967280 }
   0xe   :  { %223 = dma.done.wait [#allocation8], 32  }
   0xf   :  { %224 = vsyncadd [#allocation8], 4294967264 }
  0x10   :  { %225 = dma.done.wait [#allocation4], 256  }
  0x11   :  { %226 = vsyncadd [#allocation4], 4294967040 }
  0x12   :  { %71 = sfence }
  0x13   :  { %s74_s9 = sld [smem:[#allocation7 + %s288_s0]]  ;;  %v76_v0 = vld [vmem:[#allocation10] sm:$0xff]  ;;  %v77_v1 = vld [vmem:[#allocation10 + $0x8] sm:$0xff]  ;;  %s233_s15 = smov [#allocation11]  }
  0x14   :  { %s75_s11 = sld [smem:[#allocation9 + %s288_s0]]  ;;  %s102_s16 = sshll.u32 %s233_s15, 4  ;;  %s103_s16 = int_to_ptr.vmem [resolvable:$true] %s102_s16 }
  0x15   :  { %s73_s14 = sld [smem:[#allocation3 + %s288_s0]]  ;;  %s104_s0 = sshll.u32 %s293_s5, 4  ;;  %s105_s0 = int_to_ptr.hbm [resolvable:$true] %s104_s0 }
  0x19   :  { %v78_v2 = vstv %s74_s9 }
  0x1a   :  { %v79_v3 = vmul.f32 %v78_v2, %v76_v0  ;;  %v80_v4 = vmul.f32 %v78_v2, %v77_v1  ;;  %v83_v16 = vstv %s75_s11 }
  0x1b   :  { %v92_v25 = vstv %s73_s14 }
  0x1c   :  { %v118_v5 = vcvt.f32.s32 %v79_v3  ;;  %v116_v6 = vand.u32 2147483647, %v79_v3  ;;  %v126_v7 = vcvt.f32.s32 %v80_v4  ;;  %v121_v9 = vand.u32 2147483648, %v79_v3 }
  0x1d   :  { %v124_v10 = vand.u32 2147483647, %v80_v4  ;;  %v129_v12 = vand.u32 2147483648, %v80_v4 }
  0x1e   :  { %v119_v8 = vcvt.s32.f32 %v118_v5  ;;  %v127_v11 = vcvt.s32.f32 %v126_v7  ;;  %vm117_vm0 = vcmp.lt.f32.partialorder %v116_v6, 8388608.0 }
  0x1f   :  { %vm125_vm1 = vcmp.lt.f32.partialorder %v124_v10, 8388608.0 }
  0x20   :  { %v120_v13 = vand.u32 2147483647, %v119_v8  ;;  %v128_v14 = vand.u32 2147483647, %v127_v11 }
  0x22   :  { %v122_v15 = vor.u32 %v121_v9, %v120_v13  ;;  %v130_v17 = vor.u32 %v129_v12, %v128_v14 }
  0x24   :  { %v123_v18 = vsel %vm117_vm0, %v122_v15, %v79_v3  ;;  %v131_v20 = vsel %vm125_vm1, %v130_v17, %v80_v4 }
  0x25   :  { %v84_v19 = vadd.f32 %v123_v18, %v83_v16  ;;  %v85_v21 = vadd.f32 %v131_v20, %v83_v16 }
  0x27   :  { %v86_v22 = vmax.f32 %v84_v19, 0.0  ;;  %v87_v23 = vmax.f32 %v85_v21, 0.0 }
  0x29   :  { %v88_v24 = vmin.f32 %v86_v22, 255.0  ;;  %v89_v26 = vmin.f32 %v87_v23, 255.0 }
  0x2b   :  { %v90_v27 = vsub.f32 %v88_v24, %v83_v16  ;;  %v91_v28 = vsub.f32 %v89_v26, %v83_v16 }
  0x2d   :  { %v93_v29 = vmul.f32 %v92_v25, %v90_v27  ;;  %v94_v30 = vmul.f32 %v92_v25, %v91_v28 }
  0x2f   :  { %95 = vst [vmem:[#allocation11] sm:$0xff] %v93_v29 }
  0x30   :  { %96 = vst [vmem:[#allocation11 + $0x8] sm:$0xff] %v94_v30 }
  0x31   :  { %107 = dma.vmem_to_hbm [thread:$0]  %s103_s16, 256, %s105_s0, [#allocation5]  }
  0x32   :  { %227 = dma.done.wait [#allocation5], 256  }
  0x33   :  { %228 = vsyncadd [#allocation5], 4294967040 }
  0x34   :  { %112 = vsyncpa [#allocation4], 1 }
  0x35   :  { %113 = vsyncpa [#allocation5], 1 }
  0x36   :  { %114 = vsyncpa [#allocation6], 1 }
  0x37   :  { %115 = vsyncpa [#allocation8], 1 }

</bundles_post_ra>
